<compile_context>
chip_gen: v7x
topology: tpu7x:2x2x1
jax: 0.10.0
libtpu: 0.0.40
codegen_flags: <defaults>
</compile_context>

<pallas_src>
import functools

import jax
import jax.numpy as jnp
from jax.experimental import pallas as pl
from jax.experimental.pallas import tpu as pltpu


def _round_up(x, m):
    return (x + m - 1) // m * m


def fused_sage_kernel(*refs, num_layers, fo_ps):
    """All SAGEConv layers fused in one VMEM-resident body.

    refs = (A, inv_deg, X, [W_cat, b] * num_layers, out)
      A       : (Np, Np)     bf16, un-normalized edge counts A[dst, src]
      inv_deg : (Np, 1)      f32,  1 / max(in_deg, 1) per dst row
      X       : (Np, F0p)    bf16
      W_cat   : (Fip, 2*Fop) bf16, concat([W_l, W_r], axis=1)
      b       : (1, Fop)     f32
    """
    a_ref, inv_ref, x_ref = refs[0], refs[1], refs[2]
    o_ref = refs[-1]
    p_refs = refs[3:-1]
    assert len(p_refs) == 2 * num_layers

    a = a_ref[...]            # bf16 edge counts, resident in VMEM for every layer
    inv_deg = inv_ref[...]    # f32 (Np, 1)
    h = x_ref[...]            # bf16 (Np, F0p)

    for i in range(num_layers):
        w_cat_ref, b_ref = p_refs[2 * i], p_refs[2 * i + 1]
        fo = fo_ps[i]
        # One fused MXU matmul for both branches: z = h @ [W_l | W_r], f32 acc.
        z = jnp.dot(h, w_cat_ref[...], preferred_element_type=jnp.float32)
        t = z[:, :fo]          # h @ W_l   (split at 128-aligned boundary: no relayout)
        r = z[:, fo:]          # h @ W_r
        # Reassociated aggregation A @ (h @ W_l); mean applied as f32 post-scale.
        agg = jnp.dot(a, t.astype(jnp.bfloat16), preferred_element_type=jnp.float32)
        y = agg * inv_deg + r + b_ref[...]
        if i < num_layers - 1:
            y = jnp.maximum(y, 0.0)            # ReLU, f32 elementwise
            # TODO(synk): dropout(p=0.5) is identity in eval mode; training-mode
            # dropout would use pltpu.prng_seed / pltpu.prng_random_bits here.
            h = y.astype(jnp.bfloat16)         # bf16 for the next MXU pass
        else:
            h = y
    o_ref[...] = h.astype(o_ref.dtype)


def build_graph_operands(edge_index, num_nodes, n_p):
    """A[dst, src] = (#edges src->dst) as bf16 (exact small ints), and f32 1/deg."""
    src, dst = edge_index[0], edge_index[1]
    a = jnp.zeros((num_nodes, num_nodes), jnp.float32).at[dst, src].add(1.0)
    deg = a.sum(axis=1, keepdims=True)
    inv_deg = jnp.where(deg > 0, 1.0 / deg, 0.0)
    a_p = jnp.zeros((n_p, n_p), jnp.bfloat16).at[:num_nodes, :num_nodes].set(
        a.astype(jnp.bfloat16))
    inv_p = jnp.zeros((n_p, 1), jnp.float32).at[:num_nodes, :].set(inv_deg)
    return a_p, inv_p


def pack_params(params, dims_p):
    """Pad weights and pre-concatenate W_cat = [W_l | W_r] per layer (done once)."""
    flat = []
    for i, (w_l, w_r, b) in enumerate(params):
        fi, fo = dims_p[i], dims_p[i + 1]
        w_cat = jnp.zeros((fi, 2 * fo), jnp.bfloat16)
        w_cat = w_cat.at[:w_l.shape[0], :w_l.shape[1]].set(w_l.astype(jnp.bfloat16))
        w_cat = w_cat.at[:w_r.shape[0], fo:fo + w_r.shape[1]].set(
            w_r.astype(jnp.bfloat16))
        b_p = jnp.zeros((1, fo), jnp.float32).at[:, :b.shape[1]].set(
            b.astype(jnp.float32))
        flat += [w_cat, b_p]
    return flat


def make_sage_forward(edge_index, num_nodes, params):
    """Build graph operands + fused weights once; return a jitted forward(x)."""
    num_layers = len(params)
    dims = [params[0][0].shape[0]] + [w_l.shape[1] for (w_l, _, _) in params]
    dims_p = [_round_up(d, 128) for d in dims]      # lane-dense feature dims
    n_p = _round_up(num_nodes, 128)

    a_p, inv_p = build_graph_operands(edge_index, num_nodes, n_p)
    flat_params = pack_params(params, dims_p)
    fo_ps = tuple(dims_p[1:])

    kernel = functools.partial(fused_sage_kernel, num_layers=num_layers, fo_ps=fo_ps)
    n_inputs = 3 + 2 * num_layers

    pallas_fn = pl.pallas_call(
        kernel,
        out_shape=jax.ShapeDtypeStruct((n_p, dims_p[-1]), jnp.float32),
        in_specs=[pl.BlockSpec(memory_space=pltpu.MemorySpace.VMEM)] * n_inputs,
        out_specs=pl.BlockSpec(memory_space=pltpu.MemorySpace.VMEM),
        compiler_params=pltpu.CompilerParams(vmem_limit_bytes=32 * 1024 * 1024),
    )

    @jax.jit
    def forward(x):
        n, f_in = x.shape
        x_p = jnp.zeros((n_p, dims_p[0]), jnp.bfloat16).at[:n, :f_in].set(
            x.astype(jnp.bfloat16))
        out_p = pallas_fn(a_p, inv_p, x_p, *flat_params)
        return out_p[:num_nodes, :dims[-1]]

    return forward


def init_sage_params(key, in_channels, hidden_channels, out_channels, num_layers=2):
    """Deterministic parameter init; weights stored as (F_in, F_out)."""
    dims = [in_channels] + [hidden_channels] * (num_layers - 1) + [out_channels]
    params = []
    for layer in range(num_layers):
        f_in, f_out = dims[layer], dims[layer + 1]
        key, k_l, k_r, k_b = jax.random.split(key, 4)
        scale = 1.0 / jnp.sqrt(jnp.float32(f_in))
        w_l = jax.random.normal(k_l, (f_in, f_out), jnp.float32) * scale
        w_r = jax.random.normal(k_r, (f_in, f_out), jnp.float32) * scale
        b = jax.random.normal(k_b, (1, f_out), jnp.float32) * 0.01
        params.append((w_l, w_r, b))
    return params


if __name__ == "__main__":
    key = jax.random.PRNGKey(0)
    k_x, k_src, k_dst, k_param = jax.random.split(key, 4)

    num_nodes = 64
    in_channels = 32
    hidden_channels = 32
    out_channels = 16
    num_edges = 256

    x = jax.random.normal(k_x, (num_nodes, in_channels), jnp.float32)
    edge_index = jnp.stack(
        [
            jax.random.randint(k_src, (num_edges,), 0, num_nodes),
            jax.random.randint(k_dst, (num_edges,), 0, num_nodes),
        ],
        axis=0,
    )  # [2, E], row 0 = source, row 1 = target

    params = init_sage_params(k_param, in_channels, hidden_channels, out_channels)

    forward = make_sage_forward(edge_index, num_nodes, params)  # graph/weights cached
    out = forward(x)
    jax.block_until_ready(out)
    assert out.shape == (num_nodes, out_channels)
    print("KERNEL_OK")
</pallas_src>

<mosaic_0001>
module attributes {stable_mosaic.version = 11 : i64} {
  func.func @fused_sage_kernel(%arg0: memref<128x128xbf16, #tpu.memory_space<vmem>>, %arg1: memref<128x1xf32, #tpu.memory_space<vmem>>, %arg2: memref<128x128xbf16, #tpu.memory_space<vmem>>, %arg3: memref<128x256xbf16, #tpu.memory_space<vmem>>, %arg4: memref<1x128xf32, #tpu.memory_space<vmem>>, %arg5: memref<128x256xbf16, #tpu.memory_space<vmem>>, %arg6: memref<1x128xf32, #tpu.memory_space<vmem>>, %arg7: memref<128x128xf32, #tpu.memory_space<vmem>>) attributes {dimension_semantics = [], scalar_prefetch = 0 : i64, scratch_operands = 0 : i64, tpu.core_type = #tpu.core_type<tc>} {
    %c0 = arith.constant 0 : index
    %c0_0 = arith.constant 0 : index
    %0 = vector.load %arg0[%c0, %c0_0] : memref<128x128xbf16, #tpu.memory_space<vmem>>, vector<128x128xbf16>
    %c0_1 = arith.constant 0 : index
    %c0_2 = arith.constant 0 : index
    %1 = vector.load %arg1[%c0_1, %c0_2] : memref<128x1xf32, #tpu.memory_space<vmem>>, vector<128x1xf32>
    %c0_3 = arith.constant 0 : index
    %c0_4 = arith.constant 0 : index
    %2 = vector.load %arg2[%c0_3, %c0_4] : memref<128x128xbf16, #tpu.memory_space<vmem>>, vector<128x128xbf16>
    %c0_5 = arith.constant 0 : index
    %c0_6 = arith.constant 0 : index
    %3 = vector.load %arg3[%c0_5, %c0_6] : memref<128x256xbf16, #tpu.memory_space<vmem>>, vector<128x256xbf16>
    %cst = arith.constant dense<0.000000e+00> : vector<128x256xf32>
    %4 = tpu.matmul %2, %3, %cst {dimension_numbers = #tpu.dot_dimension_numbers<[1], [0], [0], [1], [0, 0, 1, 1], [], []>} : vector<128x128xbf16>, vector<128x256xbf16>, vector<128x256xf32> -> vector<128x256xf32>
    %5 = vector.extract_strided_slice %4 {offsets = [0, 0], sizes = [128, 128], strides = [1, 1]} : vector<128x256xf32> to vector<128x128xf32>
    %6 = vector.extract_strided_slice %4 {offsets = [0, 128], sizes = [128, 128], strides = [1, 1]} : vector<128x256xf32> to vector<128x128xf32>
    %7 = arith.truncf %5 : vector<128x128xf32> to vector<128x128xbf16>
    %cst_7 = arith.constant dense<0.000000e+00> : vector<128x128xf32>
    %8 = tpu.matmul %0, %7, %cst_7 {dimension_numbers = #tpu.dot_dimension_numbers<[1], [0], [0], [1], [0, 0, 1, 1], [], []>} : vector<128x128xbf16>, vector<128x128xbf16>, vector<128x128xf32> -> vector<128x128xf32>
    %9 = vector.broadcast %1 : vector<128x1xf32> to vector<128x128xf32>
    %10 = arith.mulf %8, %9 : vector<128x128xf32>
    %11 = arith.addf %10, %6 : vector<128x128xf32>
    %c0_8 = arith.constant 0 : index
    %c0_9 = arith.constant 0 : index
    %12 = vector.load %arg4[%c0_8, %c0_9] : memref<1x128xf32, #tpu.memory_space<vmem>>, vector<1x128xf32>
    %13 = vector.broadcast %12 : vector<1x128xf32> to vector<128x128xf32>
    %14 = arith.addf %11, %13 : vector<128x128xf32>
    %cst_10 = arith.constant 0.000000e+00 : f32
    %15 = vector.broadcast %cst_10 : f32 to vector<128x128xf32>
    %16 = arith.maximumf %14, %15 : vector<128x128xf32>
    %17 = arith.truncf %16 : vector<128x128xf32> to vector<128x128xbf16>
    %c0_11 = arith.constant 0 : index
    %c0_12 = arith.constant 0 : index
    %18 = vector.load %arg5[%c0_11, %c0_12] : memref<128x256xbf16, #tpu.memory_space<vmem>>, vector<128x256xbf16>
    %cst_13 = arith.constant dense<0.000000e+00> : vector<128x256xf32>
    %19 = tpu.matmul %17, %18, %cst_13 {dimension_numbers = #tpu.dot_dimension_numbers<[1], [0], [0], [1], [0, 0, 1, 1], [], []>} : vector<128x128xbf16>, vector<128x256xbf16>, vector<128x256xf32> -> vector<128x256xf32>
    %20 = vector.extract_strided_slice %19 {offsets = [0, 0], sizes = [128, 128], strides = [1, 1]} : vector<128x256xf32> to vector<128x128xf32>
    %21 = vector.extract_strided_slice %19 {offsets = [0, 128], sizes = [128, 128], strides = [1, 1]} : vector<128x256xf32> to vector<128x128xf32>
    %22 = arith.truncf %20 : vector<128x128xf32> to vector<128x128xbf16>
    %cst_14 = arith.constant dense<0.000000e+00> : vector<128x128xf32>
    %23 = tpu.matmul %0, %22, %cst_14 {dimension_numbers = #tpu.dot_dimension_numbers<[1], [0], [0], [1], [0, 0, 1, 1], [], []>} : vector<128x128xbf16>, vector<128x128xbf16>, vector<128x128xf32> -> vector<128x128xf32>
    %24 = vector.broadcast %1 : vector<128x1xf32> to vector<128x128xf32>
    %25 = arith.mulf %23, %24 : vector<128x128xf32>
    %26 = arith.addf %25, %21 : vector<128x128xf32>
    %c0_15 = arith.constant 0 : index
    %c0_16 = arith.constant 0 : index
    %27 = vector.load %arg6[%c0_15, %c0_16] : memref<1x128xf32, #tpu.memory_space<vmem>>, vector<1x128xf32>
    %28 = vector.broadcast %27 : vector<1x128xf32> to vector<128x128xf32>
    %29 = arith.addf %26, %28 : vector<128x128xf32>
    %c0_17 = arith.constant 0 : index
    %c0_18 = arith.constant 0 : index
    %30 = vector.load %arg7[%c0_17, %c0_18] : memref<128x128xf32, #tpu.memory_space<vmem>>, vector<128x128xf32>
    tpu.vector_store %arg7[%c0_17, %c0_18], %29 {strides = array<i32>} : memref<128x128xf32, #tpu.memory_space<vmem>>, vector<128x128xf32>,
    return
  }
}

</mosaic_0001>

<bundles_post_ra>
// kernel: forward.1
= control target key start
LH: loop header
LB: loop body
LE: loop exit
PB: predicated region body
PF: predicated region fallthrough
CT: control target
= control target key end

     0   :  { %v1246_v1 = vmov 0   ;;  %s1772_s3 = inlined_call_operand.vmem [shape: bf16[128,256], index: 3, kind: input, shape index: {}]   ;;  %s1773_s2 = inlined_call_operand.vmem [shape: bf16[128,128], index: 2, kind: input, shape index: {}]   ;;  %s1774_s0 = inlined_call_operand.vmem [shape: bf16[128,128], index: 0, kind: input, shape index: {}]   ;;  %s1775_s1 = inlined_call_operand.vmem [shape: f32[128,1], index: 1, kind: input, shape index: {}]   ;;  %s1776_s5 = inlined_call_operand.vmem [shape: bf16[128,256], index: 5, kind: input, shape index: {}]   ;;  %s1777_s4 = inlined_call_operand.vmem [shape: f32[1,128], index: 4, kind: input, shape index: {}]   ;;  %s1778_s6 = inlined_call_operand.vmem [shape: f32[1,128], index: 6, kind: input, shape index: {}]   ;;  %s1779_s7 = inlined_call_operand.vmem [shape: f32[128,128], index: 7, kind: output, shape index: {}]  }
   0x1   :  { %v1182_v0 = vld [vmem:[%s1772_s3 + $0x4] ss:$8 sps:$4 sm:$0xff]   ;;  %251 = vmatprep.mubr.bf16.mxu0 %v1246_v1  ;;  %1180 = vset.pattern.permute.xlu0 %v1246_v1  ;;  %v1184_v2 = vld [vmem:[%s1772_s3] ss:$8 sps:$4 sm:$0xff]   ;;  %v1185_v3 = vld [vmem:[%s1772_s3 + $0x14] ss:$8 sps:$4 sm:$0xff]  }
   0x2   :  { %1181 = vset.pattern.permute.xlu1 %v1246_v1  ;;  %219 = vmatprep.subr.bf16.mxu0 %v1182_v0  ;;  %v1187_v4 = vld [vmem:[%s1772_s3 + $0x10] ss:$8 sps:$4 sm:$0xff]   ;;  %v1188_v5 = vld [vmem:[%s1772_s3 + $0x24] ss:$8 sps:$4 sm:$0xff]   ;;  %v1190_v6 = vld [vmem:[%s1772_s3 + $0x20] ss:$8 sps:$4 sm:$0xff]  }
   0x3   :  { %220 = vmatpush1.bf16.msra.mxu0 %v1184_v2  ;;  %v1191_v7 = vld [vmem:[%s1772_s3 + $0x34] ss:$8 sps:$4 sm:$0xff]   ;;  %v1193_v8 = vld [vmem:[%s1772_s3 + $0x30] ss:$8 sps:$4 sm:$0xff]   ;;  %v1194_v9 = vld [vmem:[%s1772_s3 + $0x44] ss:$8 sps:$4 sm:$0xff]  }
   0x4   :  { %221 = vmatprep.subr.bf16.mxu0 %v1185_v3  ;;  %v1196_v10 = vld [vmem:[%s1772_s3 + $0x40] ss:$8 sps:$4 sm:$0xff]   ;;  %v1197_v11 = vld [vmem:[%s1772_s3 + $0x54] ss:$8 sps:$4 sm:$0xff]   ;;  %v1199_v12 = vld [vmem:[%s1772_s3 + $0x50] ss:$8 sps:$4 sm:$0xff]  }
   0x5   :  { %v1200_v13 = vld [vmem:[%s1772_s3 + $0x64] ss:$8 sps:$4 sm:$0xff]   ;;  %v1202_v14 = vld [vmem:[%s1772_s3 + $0x60] ss:$8 sps:$4 sm:$0xff]   ;;  %v1203_v15 = vld [vmem:[%s1772_s3 + $0x74] ss:$8 sps:$4 sm:$0xff]  }
   0x6   :  { %v1205_v16 = vld [vmem:[%s1772_s3 + $0x70] ss:$8 sps:$4 sm:$0xff]   ;;  %v1206_v17 = vld [vmem:[%s1773_s2] sm:$0xff]   ;;  %v1207_v18 = vld [vmem:[%s1773_s2 + $0x8] sm:$0xff]  }
   0x7   :  { %222 = vmatpush1.bf16.msra.mxu0 %v1187_v4  ;;  %v1208_v19 = vld [vmem:[%s1773_s2 + $0x10] sm:$0xff]   ;;  %v1209_v20 = vld [vmem:[%s1773_s2 + $0x18] sm:$0xff]   ;;  %v1210_v21 = vld [vmem:[%s1773_s2 + $0x20] sm:$0xff]  }
   0x8   :  { %223 = vmatprep.subr.bf16.mxu0 %v1188_v5  ;;  %v1211_v22 = vld [vmem:[%s1773_s2 + $0x28] sm:$0xff]   ;;  %v1212_v23 = vld [vmem:[%s1773_s2 + $0x30] sm:$0xff]   ;;  %v1213_v24 = vld [vmem:[%s1773_s2 + $0x38] sm:$0xff]  }
   0x9   :  { %v1214_v25 = vld [vmem:[%s1774_s0] sm:$0xff]   ;;  %v45_v27 = vld [vmem:[%s1775_s1 + $0x10] sm:$0xff]  ;;  %v44_v28 = vld [vmem:[%s1775_s1 + $0x8] sm:$0xff] }
   0xa   :  { %1131 = vmatprep.mubr.bf16.mxu1 %v1214_v25  ;;  %v43_v26 = vld [vmem:[%s1775_s1] sm:$0xff]  ;;  %497 = vperm.xlu1 %1181, %v45_v27   ;;  %v46_v29 = vld [vmem:[%s1775_s1 + $0x18] sm:$0xff]  ;;  %v48_v31 = vld [vmem:[%s1775_s1 + $0x28] sm:$0xff] }
   0xb   :  { %224 = vmatpush1.bf16.msra.mxu0 %v1190_v6  ;;  %487 = vperm.xlu0 %1180, %v43_v26   ;;  %v47_v30 = vld [vmem:[%s1775_s1 + $0x20] sm:$0xff]  ;;  %v49_v32 = vld [vmem:[%s1775_s1 + $0x30] sm:$0xff]  ;;  %v50_v33 = vld [vmem:[%s1775_s1 + $0x38] sm:$0xff] }
   0xc   :  { %225 = vmatprep.subr.bf16.mxu0 %v1191_v7  ;;  %v51_v34 = vld [vmem:[%s1775_s1 + $0x40] sm:$0xff]  ;;  %v52_v35 = vld [vmem:[%s1775_s1 + $0x48] sm:$0xff]  ;;  %v53_v36 = vld [vmem:[%s1775_s1 + $0x50] sm:$0xff] }
   0xd   :  { %v54_v37 = vld [vmem:[%s1775_s1 + $0x58] sm:$0xff]  ;;  %v55_v38 = vld [vmem:[%s1775_s1 + $0x60] sm:$0xff]  ;;  %v56_v39 = vld [vmem:[%s1775_s1 + $0x68] sm:$0xff] }
   0xe   :  { %502 = vperm.xlu1 %1181, %v46_v29   ;;  %v57_v40 = vld [vmem:[%s1775_s1 + $0x70] sm:$0xff]  ;;  %v58_v41 = vld [vmem:[%s1775_s1 + $0x78] sm:$0xff]  ;;  %v1487_v27 = vld [vmem:[%s1774_s0 + $0x20] sm:$0xff]  }
   0xf   :  { %226 = vmatpush1.bf16.msra.mxu0 %v1193_v8  ;;  %492 = vperm.xlu0 %1180, %v44_v28   ;;  %v1482_v26 = vld [vmem:[%s1774_s0 + $0x18] sm:$0xff]   ;;  %v1228_v28 = vld [vmem:[%s1776_s5 + $0x20] ss:$8 sps:$4 sm:$0xff]  }
  0x10   :  { %227 = vmatprep.subr.bf16.mxu0 %v1194_v9  ;;  %v1233_v29 = vld [vmem:[%s1776_s5 + $0x34] ss:$8 sps:$4 sm:$0xff]  }
  0x12   :  { %512 = vperm.xlu1 %1181, %v48_v31   ;;  %v1236_v31 = vld [vmem:[%s1776_s5 + $0x44] ss:$8 sps:$4 sm:$0xff]  }
  0x13   :  { %228 = vmatpush1.bf16.msra.mxu0 %v1196_v10  ;;  %507 = vperm.xlu0 %1180, %v47_v30   ;;  %v1231_v30 = vld [vmem:[%s1776_s5 + $0x30] ss:$8 sps:$4 sm:$0xff]  }
  0x14   :  { %229 = vmatprep.subr.bf16.mxu0 %v1197_v11 }
  0x16   :  { %522 = vperm.xlu1 %1181, %v50_v33   ;;  %v1511_v33 = vld [vmem:[%s1774_s0 + $0x30] sm:$0xff]  }
  0x17   :  { %230 = vmatpush1.bf16.msra.mxu0 %v1199_v12  ;;  %517 = vperm.xlu0 %1180, %v49_v32   ;;  %v1506_v32 = vld [vmem:[%s1774_s0 + $0x28] sm:$0xff]  }
  0x18   :  { %231 = vmatprep.subr.bf16.mxu0 %v1200_v13 }
  0x1a   :  { %532 = vperm.xlu1 %1181, %v52_v35   ;;  %v1521_v35 = vld [vmem:[%s1774_s0 + $0x38] sm:$0xff]  }
  0x1b   :  { %232 = vmatpush1.bf16.msra.mxu0 %v1202_v14  ;;  %527 = vperm.xlu0 %1180, %v51_v34   ;;  %v1234_v34 = vld [vmem:[%s1776_s5 + $0x40] ss:$8 sps:$4 sm:$0xff]  }
  0x1c   :  { %233 = vmatprep.subr.bf16.mxu0 %v1203_v15 }
  0x1e   :  { %542 = vperm.xlu1 %1181, %v54_v37   ;;  %v1237_v37 = vld [vmem:[%s1776_s5 + $0x50] ss:$8 sps:$4 sm:$0xff]  }
  0x1f   :  { %234 = vmatpush1.bf16.msra.mxu0 %v1205_v16  ;;  %537 = vperm.xlu0 %1180, %v53_v36   ;;  %v1239_v36 = vld [vmem:[%s1776_s5 + $0x54] ss:$8 sps:$4 sm:$0xff]  }
  0x22   :  { %252 = vmatmul.mubr.bf16.vlgmr.msra.gmra.mrb[0].mxu0 %v1206_v17  ;;  %552 = vperm.xlu1 %1181, %v56_v39   ;;  %v1240_v39 = vld [vmem:[%s1776_s5 + $0x60] ss:$8 sps:$4 sm:$0xff]  }
  0x23   :  { %261 = vmatprep.mubr.bf16.mxu0 %v1246_v1  ;;  %547 = vperm.xlu0 %1180, %v55_v38   ;;  %v1242_v38 = vld [vmem:[%s1776_s5 + $0x64] ss:$8 sps:$4 sm:$0xff]  }
  0x26   :  { %562 = vperm.xlu1 %1181, %v58_v41   ;;  %v1243_v41 = vld [vmem:[%s1776_s5 + $0x70] ss:$8 sps:$4 sm:$0xff]  }
  0x27   :  { %557 = vperm.xlu0 %1180, %v57_v40   ;;  %v1245_v40 = vld [vmem:[%s1776_s5 + $0x74] ss:$8 sps:$4 sm:$0xff]  }
  0x2a   :  { %262 = vmatmul.mubr.bf16.gmra.mrb[4].mxu0 %v1207_v18 }
  0x2b   :  { %271 = vmatprep.mubr.bf16.mxu0 %v1246_v1 }
  0x32   :  { %272 = vmatmul.mubr.bf16.gmra.mrb[8].mxu0 %v1208_v19  ;;  %v1224_v19 = vld [vmem:[%s1776_s5 + $0x4] ss:$8 sps:$4 sm:$0xff]  }
  0x33   :  { %281 = vmatprep.mubr.bf16.mxu0 %v1246_v1 }
  0x3a   :  { %282 = vmatmul.mubr.bf16.gmra.mrb[12].mxu0 %v1209_v20  ;;  %v1458_v20 = vld [vmem:[%s1774_s0 + $0x8] sm:$0xff]  }
  0x3b   :  { %291 = vmatprep.mubr.bf16.mxu0 %v1246_v1 }
  0x42   :  { %292 = vmatmul.mubr.bf16.gmra.mrb[16].mxu0 %v1210_v21  ;;  %v1463_v21 = vld [vmem:[%s1774_s0 + $0x10] sm:$0xff]  }
  0x43   :  { %301 = vmatprep.mubr.bf16.mxu0 %v1246_v1 }
  0x4a   :  { %302 = vmatmul.mubr.bf16.gmra.mrb[20].mxu0 %v1211_v22  ;;  %v1222_v22 = vld [vmem:[%s1776_s5] ss:$8 sps:$4 sm:$0xff]  }
  0x4b   :  { %311 = vmatprep.mubr.bf16.mxu0 %v1246_v1 }
  0x52   :  { %312 = vmatmul.mubr.bf16.gmra.mrb[24].mxu0 %v1212_v23  ;;  %v1227_v23 = vld [vmem:[%s1776_s5 + $0x14] ss:$8 sps:$4 sm:$0xff]  }
  0x53   :  { %321 = vmatprep.mubr.bf16.mxu0 %v1246_v1 }
  0x5a   :  { %322 = vmatmul.mubr.bf16.gmra.mrb[28].mxu0 %v1213_v24  ;;  %v1225_v24 = vld [vmem:[%s1776_s5 + $0x10] ss:$8 sps:$4 sm:$0xff]  }
  0x5b   :  { %1163 = vmatprep.mubr.bf16.mxu0 %v1214_v25  ;;  %v1230_v25 = vld [vmem:[%s1776_s5 + $0x24] ss:$8 sps:$4 sm:$0xff]  }
  0xf5   :  { %v253_v42 = vpop.f32.mrb[0].mxu0 }
  0xf6   :  { %v1420_v43 = vpop.f32.mrb[1].mxu0 }
  0xf7   :  { %v257_v44 = vpop.f32.mrb[2].mxu0 }
  0xf8   :  { %v332_v45 = vpack.c.bf16 %v257_v44, %v253_v42  ;;  %v1422_v46 = vpop.f32.mrb[3].mxu0  ;;  %v1543_v42 = vpop.permute.xlu0 %487 }
  0xf9   :  { %v1545_v44 = vpop.permute.xlu1 %497 }
  0xfa   :  { %1115 = vmatprep.subr.bf16.mxu1 %v332_v45 }
  0xfb   :  { %1116 = vmatpush3.bf16.msra.mxu1 %v332_v45 }
  0xfc   :  { %v1547_v45 = vpop.permute.xlu0 %492 }
  0xfd   :  { %v263_v47 = vpop.f32.mrb[4].mxu0 }
  0xfe   :  { %v1424_v48 = vpop.f32.mrb[5].mxu0 }
  0xff   :  { %v267_v49 = vpop.f32.mrb[6].mxu0 }
 0x100   :  { %v333_v50 = vpack.c.bf16 %v267_v49, %v263_v47  ;;  %v1426_v51 = vpop.f32.mrb[7].mxu0  ;;  %v1549_v47 = vpop.permute.xlu1 %502 }
 0x101   :  { %v1551_v49 = vpop.permute.xlu0 %507 }
 0x102   :  { %1117 = vmatprep.subr.bf16.mxu1 %v333_v50 }
 0x103   :  { %1118 = vmatpush3.bf16.msra.mxu1 %v333_v50 }
 0x104   :  { %v1553_v50 = vpop.permute.xlu1 %512 }
 0x105   :  { %v273_v52 = vpop.f32.mrb[8].mxu0 }
 0x106   :  { %v1428_v53 = vpop.f32.mrb[9].mxu0 }
 0x107   :  { %v277_v54 = vpop.f32.mrb[10].mxu0 }
 0x108   :  { %v334_v55 = vpack.c.bf16 %v277_v54, %v273_v52  ;;  %v1430_v56 = vpop.f32.mrb[11].mxu0  ;;  %v1555_v52 = vpop.permute.xlu0 %517 }
 0x10a   :  { %1119 = vmatprep.subr.bf16.mxu1 %v334_v55 }
 0x10b   :  { %1120 = vmatpush3.bf16.msra.mxu1 %v334_v55 }
 0x10d   :  { %v283_v57 = vpop.f32.mrb[12].mxu0 }
 0x10e   :  { %v1432_v58 = vpop.f32.mrb[13].mxu0 }
 0x10f   :  { %v287_v59 = vpop.f32.mrb[14].mxu0 }
 0x110   :  { %v335_v60 = vpack.c.bf16 %v287_v59, %v283_v57  ;;  %v1434_v61 = vpop.f32.mrb[15].mxu0  ;;  %v1558_v59 = vpop.permute.xlu1 %522 }
 0x112   :  { %1121 = vmatprep.subr.bf16.mxu1 %v335_v60 }
 0x113   :  { %1122 = vmatpush3.bf16.msra.mxu1 %v335_v60  ;;  %v1563_v60 = vld [vmem:[%s1777_s4] ss:$0 sm:$0xff] }
 0x115   :  { %v293_v62 = vpop.f32.mrb[16].mxu0 }
 0x116   :  { %v1436_v63 = vpop.f32.mrb[17].mxu0 }
 0x117   :  { %v297_v0 = vpop.f32.mrb[18].mxu0 }
 0x118   :  { %v336_v2 = vpack.c.bf16 %v297_v0, %v293_v62  ;;  %v1438_v3 = vpop.f32.mrb[19].mxu0 }
 0x11a   :  { %1123 = vmatprep.subr.bf16.mxu1 %v336_v2 }
 0x11b   :  { %1124 = vmatpush3.bf16.msra.mxu1 %v336_v2 }
 0x11d   :  { %v303_v4 = vpop.f32.mrb[20].mxu0 }
 0x11e   :  { %v1440_v5 = vpop.f32.mrb[21].mxu0 }
 0x11f   :  { %v307_v6 = vpop.f32.mrb[22].mxu0 }
 0x120   :  { %v337_v7 = vpack.c.bf16 %v307_v6, %v303_v4  ;;  %v1442_v8 = vpop.f32.mrb[23].mxu0 }
 0x122   :  { %1125 = vmatprep.subr.bf16.mxu1 %v337_v7 }
 0x123   :  { %1126 = vmatpush3.bf16.msra.mxu1 %v337_v7 }
 0x125   :  { %v313_v9 = vpop.f32.mrb[24].mxu0 }
 0x126   :  { %v1444_v10 = vpop.f32.mrb[25].mxu0 }
 0x127   :  { %v317_v11 = vpop.f32.mrb[26].mxu0 }
 0x128   :  { %v338_v12 = vpack.c.bf16 %v317_v11, %v313_v9  ;;  %v1446_v13 = vpop.f32.mrb[27].mxu0 }
 0x12a   :  { %1127 = vmatprep.subr.bf16.mxu1 %v338_v12 }
 0x12b   :  { %1128 = vmatpush3.bf16.msra.mxu1 %v338_v12 }
 0x12d   :  { %v323_v14 = vpop.f32.mrb[28].mxu0 }
 0x12e   :  { %v1448_v15 = vpop.f32.mrb[29].mxu0 }
 0x12f   :  { %v327_v16 = vpop.f32.mrb[30].mxu0 }
 0x130   :  { %v339_v17 = vpack.c.bf16 %v327_v16, %v323_v14  ;;  %v1450_v18 = vpop.f32.mrb[31].mxu0  ;;  %v1572_v14 = vpop.permute.xlu0 %527 }
 0x132   :  { %1129 = vmatprep.subr.bf16.mxu1 %v339_v17 }
 0x133   :  { %1130 = vmatpush3.bf16.msra.mxu1 %v339_v17 }
 0x134   :  { %740 = vmatprep.subr.bf16.mxu1 %v1224_v19 }
 0x136   :  { %1132 = vmatmul.mubr.bf16.vlgmr.msra.gmra.mrb[0].mxu1 %v1458_v20 }
 0x137   :  { %1135 = vmatprep.mubr.bf16.mxu1 %v1463_v21  ;;  %741 = vmatpush1.bf16.msra.mxu1 %v1222_v22 }
 0x138   :  { %742 = vmatprep.subr.bf16.mxu1 %v1227_v23 }
 0x13b   :  { %743 = vmatpush1.bf16.msra.mxu1 %v1225_v24 }
 0x13c   :  { %744 = vmatprep.subr.bf16.mxu1 %v1230_v25 }
 0x13e   :  { %1136 = vmatmul.mubr.bf16.gmra.mrb[4].mxu1 %v1482_v26 }
 0x13f   :  { %1139 = vmatprep.mubr.bf16.mxu1 %v1487_v27  ;;  %745 = vmatpush1.bf16.msra.mxu1 %v1228_v28 }
 0x140   :  { %746 = vmatprep.subr.bf16.mxu1 %v1233_v29 }
 0x143   :  { %747 = vmatpush1.bf16.msra.mxu1 %v1231_v30 }
 0x144   :  { %748 = vmatprep.subr.bf16.mxu1 %v1236_v31 }
 0x146   :  { %1140 = vmatmul.mubr.bf16.gmra.mrb[8].mxu1 %v1506_v32 }
 0x147   :  { %1143 = vmatprep.mubr.bf16.mxu1 %v1511_v33  ;;  %749 = vmatpush1.bf16.msra.mxu1 %v1234_v34 }
 0x148   :  { %750 = vmatprep.subr.bf16.mxu1 %v1239_v36 }
 0x14b   :  { %751 = vmatpush1.bf16.msra.mxu1 %v1237_v37 }
 0x14c   :  { %752 = vmatprep.subr.bf16.mxu1 %v1242_v38  ;;  %v1584_v38 = vpop.permute.xlu0 %537 }
 0x14e   :  { %1144 = vmatmul.mubr.bf16.gmra.mrb[12].mxu1 %v1521_v35 }
 0x14f   :  { %772 = vmatprep.mubr.bf16.mxu1 %v1246_v1  ;;  %753 = vmatpush1.bf16.msra.mxu1 %v1240_v39 }
 0x150   :  { %754 = vmatprep.subr.bf16.mxu1 %v1245_v40 }
 0x153   :  { %755 = vmatpush1.bf16.msra.mxu1 %v1243_v41 }
 0x209   :  { %v1133_v54 = vpop.f32.mrb[0].mxu1 }
 0x20a   :  { %v567_v55 = vmul.f32 %v1133_v54, %v1545_v44  ;;  %v422_v57 = vpop.f32.mrb[1].mxu1 }
 0x20b   :  { %v565_v62 = vmul.f32 %v1543_v42, %v422_v57  ;;  %v1134_v0 = vpop.f32.mrb[2].mxu1 }
 0x20c   :  { %v583_v2 = vadd.f32 %v567_v55, %v1424_v48  ;;  %v568_v4 = vmul.f32 %v1134_v0, %v1549_v47  ;;  %v425_v6 = vpop.f32.mrb[3].mxu1  ;;  %v1577_v48 = vpop.permute.xlu1 %532 }
 0x20d   :  { %v581_v7 = vadd.f32 %v565_v62, %v1420_v43  ;;  %v566_v9 = vmul.f32 %v1547_v45, %v425_v6 }
 0x20e   :  { %v606_v11 = vadd.f32 %v1563_v60, %v583_v2  ;;  %v584_v12 = vadd.f32 %v568_v4, %v1426_v51 }
 0x20f   :  { %v604_v16 = vadd.f32 %v1563_v60, %v581_v7  ;;  %v582_v17 = vadd.f32 %v566_v9, %v1422_v46 }
 0x210   :  { %v607_v19 = vadd.f32 %v1563_v60, %v584_v12  ;;  %v622_v43 = vmax.f32 %v606_v11, 0.0  ;;  %v1590_v57 = vpop.permute.xlu1 %542 }
 0x211   :  { %v605_v22 = vadd.f32 %v1563_v60, %v582_v17  ;;  %v1137_v23 = vpop.f32.mrb[4].mxu1  ;;  %v620_v29 = vmax.f32 %v604_v16, 0.0 }
 0x212   :  { %v623_v24 = vmax.f32 %v607_v19, 0.0  ;;  %v571_v25 = vmul.f32 %v1137_v23, %v1555_v52  ;;  %v438_v28 = vpop.f32.mrb[5].mxu1 }
 0x213   :  { %v621_v51 = vmax.f32 %v605_v22, 0.0  ;;  %v569_v30 = vmul.f32 %v1551_v49, %v438_v28  ;;  %v1138_v31 = vpop.f32.mrb[6].mxu1 }
 0x214   :  { %v587_v34 = vadd.f32 %v571_v25, %v1432_v58  ;;  %v572_v46 = vmul.f32 %v1138_v31, %v1558_v59  ;;  %v441_v36 = vpop.f32.mrb[7].mxu1  ;;  %v637_v37 = vpack.c.bf16 %v623_v24, %v622_v43  ;;  %v1603_v43 = vpop.permute.xlu1 %552 }
 0x215   :  { %v636_v39 = vpack.c.bf16 %v621_v51, %v620_v29  ;;  %v585_v40 = vadd.f32 %v569_v30, %v1428_v53  ;;  %v570_v41 = vmul.f32 %v1553_v50, %v441_v36 }
 0x216   :  { %v610_v54 = vadd.f32 %v1563_v60, %v587_v34  ;;  %v588_v55 = vadd.f32 %v572_v46, %v1434_v61  ;;  %v1598_v61 = vpop.permute.xlu0 %547 }
 0x217   :  { %v608_v62 = vadd.f32 %v1563_v60, %v585_v40  ;;  %v586_v58 = vadd.f32 %v570_v41, %v1430_v56  ;;  %773 = vmatmul.mubr.bf16.vlgmr.msra.gmra.mrb[16].mxu1 %v636_v39 }
 0x218   :  { %v611_v0 = vadd.f32 %v1563_v60, %v588_v55  ;;  %782 = vmatprep.mubr.bf16.mxu1 %v1246_v1  ;;  %v626_v4 = vmax.f32 %v610_v54, 0.0 }
 0x219   :  { %v609_v2 = vadd.f32 %v1563_v60, %v586_v58  ;;  %v1141_v53 = vpop.f32.mrb[8].mxu1  ;;  %v624_v11 = vmax.f32 %v608_v62, 0.0 }
 0x21a   :  { %v627_v6 = vmax.f32 %v611_v0, 0.0  ;;  %v575_v7 = vmul.f32 %v1141_v53, %v1584_v38  ;;  %v454_v9 = vpop.f32.mrb[9].mxu1  ;;  %v1613_v34 = vpop.permute.xlu0 %557 }
 0x21b   :  { %v625_v12 = vmax.f32 %v609_v2, 0.0  ;;  %v573_v16 = vmul.f32 %v1572_v14, %v454_v9  ;;  %v1142_v56 = vpop.f32.mrb[10].mxu1 }
 0x21c   :  { %v591_v17 = vadd.f32 %v575_v7, %v1440_v5  ;;  %v576_v19 = vmul.f32 %v1142_v56, %v1590_v57  ;;  %v457_v22 = vpop.f32.mrb[11].mxu1  ;;  %v639_v23 = vpack.c.bf16 %v627_v6, %v626_v4 }
 0x21d   :  { %v589_v24 = vadd.f32 %v573_v16, %v1436_v63  ;;  %v574_v25 = vmul.f32 %v1577_v48, %v457_v22  ;;  %v638_v28 = vpack.c.bf16 %v625_v12, %v624_v11 }
 0x21e   :  { %v614_v29 = vadd.f32 %v1563_v60, %v591_v17  ;;  %v592_v51 = vadd.f32 %v576_v19, %v1442_v8  ;;  %v1617_v8 = vpop.permute.xlu1 %562 }
 0x21f   :  { %v612_v30 = vadd.f32 %v1563_v60, %v589_v24  ;;  %v590_v31 = vadd.f32 %v574_v25, %v1438_v3  ;;  %783 = vmatmul.mubr.bf16.gmra.mrb[20].mxu1 %v637_v37 }
 0x220   :  { %v615_v5 = vadd.f32 %v1563_v60, %v592_v51  ;;  %792 = vmatprep.mubr.bf16.mxu1 %v1246_v1  ;;  %v630_v36 = vmax.f32 %v614_v29, 0.0 }
 0x221   :  { %v613_v63 = vadd.f32 %v1563_v60, %v590_v31  ;;  %v1145_v46 = vpop.f32.mrb[12].mxu1  ;;  %v628_v54 = vmax.f32 %v612_v30, 0.0 }
 0x222   :  { %v631_v39 = vmax.f32 %v615_v5, 0.0  ;;  %v579_v40 = vmul.f32 %v1145_v46, %v1613_v34  ;;  %v470_v41 = vpop.f32.mrb[13].mxu1 }
 0x223   :  { %v629_v55 = vmax.f32 %v613_v63, 0.0  ;;  %v577_v3 = vmul.f32 %v1598_v61, %v470_v41  ;;  %v1146_v37 = vpop.f32.mrb[14].mxu1 }
 0x224   :  { %v595_v62 = vadd.f32 %v579_v40, %v1448_v15  ;;  %v580_v58 = vmul.f32 %v1146_v37, %v1617_v8  ;;  %v473_v0 = vpop.f32.mrb[15].mxu1  ;;  %v641_v2 = vpack.c.bf16 %v631_v39, %v630_v36 }
 0x225   :  { %v593_v53 = vadd.f32 %v577_v3, %v1444_v10  ;;  %v578_v4 = vmul.f32 %v1603_v43, %v473_v0  ;;  %v640_v6 = vpack.c.bf16 %v629_v55, %v628_v54 }
 0x226   :  { %v618_v7 = vadd.f32 %v1563_v60, %v595_v62  ;;  %v596_v9 = vadd.f32 %v580_v58, %v1450_v18 }
 0x227   :  { %v616_v11 = vadd.f32 %v1563_v60, %v593_v53  ;;  %v594_v12 = vadd.f32 %v578_v4, %v1446_v13  ;;  %793 = vmatmul.mubr.bf16.gmra.mrb[24].mxu1 %v638_v28 }
 0x228   :  { %v619_v15 = vadd.f32 %v1563_v60, %v596_v9  ;;  %802 = vmatprep.mubr.bf16.mxu1 %v1246_v1  ;;  %v634_v56 = vmax.f32 %v618_v7, 0.0 }
 0x229   :  { %v617_v16 = vadd.f32 %v1563_v60, %v594_v12  ;;  %v632_v17 = vmax.f32 %v616_v11, 0.0 }
 0x22a   :  { %v635_v10 = vmax.f32 %v619_v15, 0.0 }
 0x22b   :  { %v633_v19 = vmax.f32 %v617_v16, 0.0 }
 0x22c   :  { %v643_v22 = vpack.c.bf16 %v635_v10, %v634_v56 }
 0x22d   :  { %v642_v24 = vpack.c.bf16 %v633_v19, %v632_v17 }
 0x22f   :  { %803 = vmatmul.mubr.bf16.gmra.mrb[28].mxu1 %v639_v23 }
 0x230   :  { %812 = vmatprep.mubr.bf16.mxu1 %v1246_v1 }
 0x237   :  { %813 = vmatmul.mubr.bf16.gmra.mrb[32].mxu1 %v640_v6 }
 0x238   :  { %822 = vmatprep.mubr.bf16.mxu1 %v1246_v1 }
 0x23f   :  { %823 = vmatmul.mubr.bf16.gmra.mrb[36].mxu1 %v641_v2 }
 0x240   :  { %832 = vmatprep.mubr.bf16.mxu1 %v1246_v1 }
 0x247   :  { %833 = vmatmul.mubr.bf16.gmra.mrb[40].mxu1 %v642_v24 }
 0x248   :  { %842 = vmatprep.mubr.bf16.mxu1 %v1246_v1 }
 0x24f   :  { %843 = vmatmul.mubr.bf16.gmra.mrb[44].mxu1 %v643_v22 }
 0x2ea   :  { %v774_v13 = vpop.f32.mrb[16].mxu1 }
 0x2eb   :  { %v1635_v18 = vpop.f32.mrb[17].mxu1 }
 0x2ec   :  { %v778_v60 = vpop.f32.mrb[18].mxu1 }
 0x2ed   :  { %v853_v25 = vpack.c.bf16 %v778_v60, %v774_v13  ;;  %v1637_v28 = vpop.f32.mrb[19].mxu1 }
 0x2ef   :  { %1147 = vmatprep.subr.bf16.mxu0 %v853_v25 }
 0x2f0   :  { %1148 = vmatpush3.bf16.msra.mxu0 %v853_v25 }
 0x2f2   :  { %v784_v23 = vpop.f32.mrb[20].mxu1 }
 0x2f3   :  { %v786_v29 = vpop.f32.mrb[21].mxu1 }
 0x2f4   :  { %v788_v51 = vpop.f32.mrb[22].mxu1 }
 0x2f5   :  { %v854_v30 = vpack.c.bf16 %v788_v51, %v784_v23  ;;  %v1639_v31 = vpop.f32.mrb[23].mxu1 }
 0x2f7   :  { %1149 = vmatprep.subr.bf16.mxu0 %v854_v30 }
 0x2f8   :  { %1150 = vmatpush3.bf16.msra.mxu0 %v854_v30 }
 0x2fa   :  { %v794_v5 = vpop.f32.mrb[24].mxu1 }
 0x2fb   :  { %v1641_v1 = vpop.f32.mrb[25].mxu1 }
 0x2fc   :  { %v798_v63 = vpop.f32.mrb[26].mxu1 }
 0x2fd   :  { %v855_v46 = vpack.c.bf16 %v798_v63, %v794_v5  ;;  %v1643_v36 = vpop.f32.mrb[27].mxu1 }
 0x2ff   :  { %1151 = vmatprep.subr.bf16.mxu0 %v855_v46 }
 0x300   :  { %1152 = vmatpush3.bf16.msra.mxu0 %v855_v46 }
 0x302   :  { %v804_v39 = vpop.f32.mrb[28].mxu1 }
 0x303   :  { %v1645_v40 = vpop.f32.mrb[29].mxu1 }
 0x304   :  { %v808_v41 = vpop.f32.mrb[30].mxu1 }
 0x305   :  { %v856_v54 = vpack.c.bf16 %v808_v41, %v804_v39  ;;  %v1647_v55 = vpop.f32.mrb[31].mxu1 }
 0x307   :  { %1153 = vmatprep.subr.bf16.mxu0 %v856_v54 }
 0x308   :  { %1154 = vmatpush3.bf16.msra.mxu0 %v856_v54 }
 0x30a   :  { %v814_v3 = vpop.f32.mrb[32].mxu1 }
 0x30b   :  { %v1649_v37 = vpop.f32.mrb[33].mxu1 }
 0x30c   :  { %v818_v62 = vpop.f32.mrb[34].mxu1 }
 0x30d   :  { %v857_v58 = vpack.c.bf16 %v818_v62, %v814_v3  ;;  %v1651_v0 = vpop.f32.mrb[35].mxu1 }
 0x30f   :  { %1155 = vmatprep.subr.bf16.mxu0 %v857_v58 }
 0x310   :  { %1156 = vmatpush3.bf16.msra.mxu0 %v857_v58 }
 0x312   :  { %v824_v2 = vpop.f32.mrb[36].mxu1 }
 0x313   :  { %v1653_v53 = vpop.f32.mrb[37].mxu1 }
 0x314   :  { %v828_v4 = vpop.f32.mrb[38].mxu1 }
 0x315   :  { %v858_v6 = vpack.c.bf16 %v828_v4, %v824_v2  ;;  %v1655_v7 = vpop.f32.mrb[39].mxu1 }
 0x317   :  { %1157 = vmatprep.subr.bf16.mxu0 %v858_v6 }
 0x318   :  { %1158 = vmatpush3.bf16.msra.mxu0 %v858_v6 }
 0x31a   :  { %v834_v9 = vpop.f32.mrb[40].mxu1 }
 0x31b   :  { %v1657_v11 = vpop.f32.mrb[41].mxu1 }
 0x31c   :  { %v838_v12 = vpop.f32.mrb[42].mxu1 }
 0x31d   :  { %v859_v15 = vpack.c.bf16 %v838_v12, %v834_v9  ;;  %v1659_v16 = vpop.f32.mrb[43].mxu1 }
 0x31f   :  { %1159 = vmatprep.subr.bf16.mxu0 %v859_v15 }
 0x320   :  { %1160 = vmatpush3.bf16.msra.mxu0 %v859_v15 }
 0x322   :  { %v844_v56 = vpop.f32.mrb[44].mxu1 }
 0x323   :  { %v1661_v10 = vpop.f32.mrb[45].mxu1 }
 0x324   :  { %v848_v17 = vpop.f32.mrb[46].mxu1 }
 0x325   :  { %v860_v19 = vpack.c.bf16 %v848_v17, %v844_v56  ;;  %v1663_v22 = vpop.f32.mrb[47].mxu1 }
 0x327   :  { %1161 = vmatprep.subr.bf16.mxu0 %v860_v19 }
 0x328   :  { %1162 = vmatpush3.bf16.msra.mxu0 %v860_v19 }
 0x32b   :  { %1164 = vmatmul.mubr.bf16.vlgmr.msra.gmra.mrb[32].mxu0 %v1458_v20  ;;  %v1676_v20 = vld [vmem:[%s1778_s6] ss:$0 sm:$0xff] }
 0x32c   :  { %1167 = vmatprep.mubr.bf16.mxu0 %v1463_v21 }
 0x333   :  { %1168 = vmatmul.mubr.bf16.gmra.mrb[36].mxu0 %v1482_v26 }
 0x334   :  { %1171 = vmatprep.mubr.bf16.mxu0 %v1487_v27 }
 0x33b   :  { %1172 = vmatmul.mubr.bf16.gmra.mrb[40].mxu0 %v1506_v32 }
 0x33c   :  { %1175 = vmatprep.mubr.bf16.mxu0 %v1511_v33 }
 0x343   :  { %1176 = vmatmul.mubr.bf16.gmra.mrb[44].mxu0 %v1521_v35 }
 0x3fe   :  { %v1165_v24 = vpop.f32.mrb[32].mxu0 }
 0x3ff   :  { %v960_v13 = vmul.f32 %v1165_v24, %v1545_v44  ;;  %v895_v60 = vpop.f32.mrb[33].mxu0 }
 0x400   :  { %v958_v21 = vmul.f32 %v895_v60, %v1543_v42  ;;  %v1166_v26 = vpop.f32.mrb[34].mxu0 }
 0x401   :  { %v976_v25 = vadd.f32 %v960_v13, %v786_v29  ;;  %v961_v27 = vmul.f32 %v1166_v26, %v1549_v47  ;;  %v898_v32 = vpop.f32.mrb[35].mxu0 }
 0x402   :  { %v974_v33 = vadd.f32 %v958_v21, %v1635_v18  ;;  %v959_v35 = vmul.f32 %v898_v32, %v1547_v45 }
 0x403   :  { %v999_v23 = vadd.f32 %v1676_v20, %v976_v25  ;;  %v977_v44 = vadd.f32 %v961_v27, %v1639_v31 }
 0x404   :  { %v997_v51 = vadd.f32 %v1676_v20, %v974_v33  ;;  %v975_v30 = vadd.f32 %v959_v35, %v1637_v28 }
 0x405   :  { %1015 = vst [vmem:[%s1779_s7 + $0x10] sm:$0xff] %v999_v23  ;;  %v1000_v42 = vadd.f32 %v1676_v20, %v977_v44 }
 0x406   :  { %1013 = vst [vmem:[%s1779_s7] sm:$0xff] %v997_v51  ;;  %v998_v45 = vadd.f32 %v1676_v20, %v975_v30  ;;  %v1169_v47 = vpop.f32.mrb[36].mxu0 }
 0x407   :  { %1016 = vst [vmem:[%s1779_s7 + $0x18] sm:$0xff] %v1000_v42  ;;  %v964_v18 = vmul.f32 %v1169_v47, %v1555_v52  ;;  %v911_v28 = vpop.f32.mrb[37].mxu0 }
 0x408   :  { %1014 = vst [vmem:[%s1779_s7 + $0x8] sm:$0xff] %v998_v45  ;;  %v962_v29 = vmul.f32 %v911_v28, %v1551_v49  ;;  %v1170_v31 = vpop.f32.mrb[38].mxu0 }
 0x409   :  { %v980_v5 = vadd.f32 %v964_v18, %v1645_v40  ;;  %v965_v63 = vmul.f32 %v1170_v31, %v1558_v59  ;;  %v914_v46 = vpop.f32.mrb[39].mxu0 }
 0x40a   :  { %v978_v39 = vadd.f32 %v962_v29, %v1641_v1  ;;  %v963_v41 = vmul.f32 %v914_v46, %v1553_v50 }
 0x40b   :  { %v1003_v54 = vadd.f32 %v1676_v20, %v980_v5  ;;  %v981_v52 = vadd.f32 %v965_v63, %v1647_v55 }
 0x40c   :  { %v1001_v3 = vadd.f32 %v1676_v20, %v978_v39  ;;  %v979_v62 = vadd.f32 %v963_v41, %v1643_v36 }
 0x40d   :  { %1019 = vst [vmem:[%s1779_s7 + $0x30] sm:$0xff] %v1003_v54  ;;  %v1004_v49 = vadd.f32 %v1676_v20, %v981_v52 }
 0x40e   :  { %1017 = vst [vmem:[%s1779_s7 + $0x20] sm:$0xff] %v1001_v3  ;;  %v1002_v50 = vadd.f32 %v1676_v20, %v979_v62  ;;  %v1173_v59 = vpop.f32.mrb[40].mxu0 }
 0x40f   :  { %1020 = vst [vmem:[%s1779_s7 + $0x38] sm:$0xff] %v1004_v49  ;;  %v968_v1 = vmul.f32 %v1173_v59, %v1584_v38  ;;  %v927_v36 = vpop.f32.mrb[41].mxu0 }
 0x410   :  { %1018 = vst [vmem:[%s1779_s7 + $0x28] sm:$0xff] %v1002_v50  ;;  %v966_v40 = vmul.f32 %v927_v36, %v1572_v14  ;;  %v1174_v55 = vpop.f32.mrb[42].mxu0 }
 0x411   :  { %v984_v58 = vadd.f32 %v968_v1, %v1653_v53  ;;  %v969_v2 = vmul.f32 %v1174_v55, %v1590_v57  ;;  %v930_v4 = vpop.f32.mrb[43].mxu0 }
 0x412   :  { %v982_v6 = vadd.f32 %v966_v40, %v1649_v37  ;;  %v967_v9 = vmul.f32 %v930_v4, %v1577_v48 }
 0x413   :  { %v1007_v12 = vadd.f32 %v1676_v20, %v984_v58  ;;  %v985_v38 = vadd.f32 %v969_v2, %v1655_v7 }
 0x414   :  { %v1005_v15 = vadd.f32 %v1676_v20, %v982_v6  ;;  %v983_v56 = vadd.f32 %v967_v9, %v1651_v0 }
 0x415   :  { %1023 = vst [vmem:[%s1779_s7 + $0x50] sm:$0xff] %v1007_v12  ;;  %v1008_v14 = vadd.f32 %v1676_v20, %v985_v38 }
 0x416   :  { %1021 = vst [vmem:[%s1779_s7 + $0x40] sm:$0xff] %v1005_v15  ;;  %v1006_v48 = vadd.f32 %v1676_v20, %v983_v56  ;;  %v1177_v57 = vpop.f32.mrb[44].mxu0 }
 0x417   :  { %1024 = vst [vmem:[%s1779_s7 + $0x58] sm:$0xff] %v1008_v14  ;;  %v972_v37 = vmul.f32 %v1177_v57, %v1613_v34  ;;  %v943_v0 = vpop.f32.mrb[45].mxu0 }
 0x418   :  { %1022 = vst [vmem:[%s1779_s7 + $0x48] sm:$0xff] %v1006_v48  ;;  %v970_v53 = vmul.f32 %v943_v0, %v1598_v61  ;;  %v1178_v7 = vpop.f32.mrb[46].mxu0 }
 0x419   :  { %v988_v17 = vadd.f32 %v972_v37, %v1661_v10  ;;  %v973_v19 = vmul.f32 %v1178_v7, %v1617_v8  ;;  %v946_v24 = vpop.f32.mrb[47].mxu0 }
 0x41a   :  { %v986_v13 = vadd.f32 %v970_v53, %v1657_v11  ;;  %v971_v60 = vmul.f32 %v946_v24, %v1603_v43 }
 0x41b   :  { %v1011_v21 = vadd.f32 %v1676_v20, %v988_v17  ;;  %v989_v34 = vadd.f32 %v973_v19, %v1663_v22 }
 0x41c   :  { %v1009_v26 = vadd.f32 %v1676_v20, %v986_v13  ;;  %v987_v25 = vadd.f32 %v971_v60, %v1659_v16 }
 0x41d   :  { %1027 = vst [vmem:[%s1779_s7 + $0x70] sm:$0xff] %v1011_v21  ;;  %v1012_v61 = vadd.f32 %v1676_v20, %v989_v34 }
 0x41e   :  { %1025 = vst [vmem:[%s1779_s7 + $0x60] sm:$0xff] %v1009_v26  ;;  %v1010_v43 = vadd.f32 %v1676_v20, %v987_v25 }
 0x41f   :  { %1028 = vst [vmem:[%s1779_s7 + $0x78] sm:$0xff] %v1012_v61 }
 0x420   :  { %1026 = vst [vmem:[%s1779_s7 + $0x68] sm:$0xff] %v1010_v43 }

</bundles_post_ra>
